<compile_context>
chip_gen: v6e
topology: v6e:2x2x1
jax: 0.10.0
libtpu: 0.0.40
codegen_flags: <defaults>
</compile_context>

<pallas_src>
import functools

import jax
import jax.numpy as jnp
from jax import lax
from jax.experimental import pallas as pl
from jax.experimental.pallas import tpu as pltpu


# ----------------------------------------------------------------------------
# helpers
# ----------------------------------------------------------------------------
def _abs_pow(v, p):
    """Elementwise |v|**p; repeated multiplies (VPU) for small integer p."""
    if p == 1.0:
        return jnp.abs(v)
    if p == 2.0:
        return v * v
    if float(p).is_integer() and 2.0 < p <= 8.0:
        a = jnp.abs(v)
        out = a
        for _ in range(int(p) - 1):
            out = out * a
        return out
    return jnp.abs(v) ** p          # fractional p: EUP transcendental path


def _sum_all(v):
    """(TH, W) -> (1, 1): lane reduce then sublane reduce (keepdims)."""
    return jnp.sum(jnp.sum(v, axis=1, keepdims=True), axis=0, keepdims=True)


def _pick_row_tile(H, W, max_tile_rows, vmem_budget_bytes):
    """Largest multiple-of-8 divisor of H fitting the VMEM budget & cap."""
    if H % 8 != 0:
        return H                                  # single full-size block
    # 2 inputs * 2 pipeline buffers * (rows * W * 4 B)
    bw_rows = max(8, vmem_budget_bytes // (4 * W * 4))
    cap = min(H, max_tile_rows, (bw_rows // 8) * 8)
    cap = max(cap, 8)
    for cand in range(cap, 7, -8):
        if H % cand == 0:
            return cand
    return H


# ----------------------------------------------------------------------------
# kernel
# ----------------------------------------------------------------------------
def _objective_kernel(x_ref, y_ref, out_ref,
                      carry_ref, acc0_ref, acc1_ref, acc2_ref,
                      *, p, lam):
    i = pl.program_id(0)
    nsteps = pl.num_programs(0)

    @pl.when(i == 0)
    def _init():
        carry_ref[...] = jnp.zeros_like(carry_ref)
        acc0_ref[...] = jnp.zeros_like(acc0_ref)
        acc1_ref[...] = jnp.zeros_like(acc1_ref)
        acc2_ref[...] = jnp.zeros_like(acc2_ref)

    x = x_ref[...]
    y = y_ref[...]
    th, w = x.shape

    # ---- data term: ||x - y||^2 partial --------------------------------
    d = x - y
    s0 = _sum_all(d * d)

    # ---- grad_x: x[i, j-1] - x[i, j]  (zero pad at image's left edge) ---
    col = lax.broadcasted_iota(jnp.int32, (th, w), 1)
    x_left = jnp.where(col == 0, 0.0, pltpu.roll(x, shift=1, axis=1))
    cx = x_left - x
    s1 = _sum_all(_abs_pow(cx, p))

    # ---- grad_y: x[i-1, j] - x[i, j]; row 0 of the tile takes the last
    #      row of the previous tile from the VMEM carry (zeros for tile 0).
    prev_last_row = carry_ref[...]                         # (1, W)
    row = lax.broadcasted_iota(jnp.int32, (th, w), 0)
    x_up = jnp.where(row == 0, prev_last_row, pltpu.roll(x, shift=1, axis=0))
    cy = x_up - x
    s2 = _sum_all(_abs_pow(cy, p))

    # carry this tile's last row forward (grid steps run sequentially).
    carry_ref[...] = x[th - 1:th, :]

    acc0_ref[...] += s0
    acc1_ref[...] += s1
    acc2_ref[...] += s2

    # ---- epilogue on the last grid step: full scalar objective ----------
    @pl.when(i == nsteps - 1)
    def _finalize():
        s0t = acc0_ref[...]
        s1t = acc1_ref[...]
        s2t = acc2_ref[...]
        if p == 1.0:
            reg = s1t + s2t
        elif p == 2.0:
            reg = jnp.sqrt(s1t) + jnp.sqrt(s2t)
        else:
            inv_p = 1.0 / p
            reg = s1t ** inv_p + s2t ** inv_p
        out_ref[...] = 0.5 * s0t + lam * reg


# ----------------------------------------------------------------------------
# wrapper
# ----------------------------------------------------------------------------
def objective_forward(x, y, lam, p, *,
                      max_tile_rows=512,
                      vmem_limit_bytes=32 * 1024 * 1024):
    """Scalar objective value; stencils + reductions + epilogue in-kernel."""
    assert x.shape == y.shape and x.ndim == 2
    H, W = x.shape
    x = x.astype(jnp.float32)
    y = y.astype(jnp.float32)

    # keep inputs (double-buffered) well inside the scoped VMEM limit
    th = _pick_row_tile(H, W, max_tile_rows, vmem_budget_bytes=8 * 1024 * 1024)
    grid = (H // th,)

    frac_p = not float(p).is_integer()
    cost = pl.CostEstimate(
        flops=12 * H * W,
        transcendentals=(2 * H * W) if frac_p else 0,
        bytes_accessed=2 * H * W * 4 + 4,
    )

    kernel = functools.partial(_objective_kernel, p=float(p), lam=float(lam))
    result = pl.pallas_call(
        kernel,
        out_shape=jax.ShapeDtypeStruct((1, 1), jnp.float32),
        grid=grid,
        in_specs=[
            pl.BlockSpec((th, W), lambda i: (i, 0)),
            pl.BlockSpec((th, W), lambda i: (i, 0)),
        ],
        out_specs=pl.BlockSpec((1, 1), lambda i: (0, 0)),
        scratch_shapes=[
            pltpu.VMEM((1, W), jnp.float32),   # row carry across tiles
            pltpu.VMEM((1, 1), jnp.float32),   # sum (x - y)^2
            pltpu.VMEM((1, 1), jnp.float32),   # sum |cx|^p
            pltpu.VMEM((1, 1), jnp.float32),   # sum |cy|^p
        ],
        compiler_params=pltpu.CompilerParams(
            dimension_semantics=("arbitrary",),
            vmem_limit_bytes=vmem_limit_bytes,
        ),
        cost_estimate=cost,
    )(x, y)
    return result[0, 0]


def objective_reference(x, y, lam, p):
    """Pure-JAX reference with identical semantics (sanity check only)."""
    d = x - y
    x_left = jnp.pad(x, ((0, 0), (1, 0)))[:, :-1]
    x_up = jnp.pad(x, ((1, 0), (0, 0)))[:-1, :]
    cx = x_left - x
    cy = x_up - x
    data = 0.5 * jnp.sum(d * d)
    np_ = lambda v: jnp.sum(jnp.abs(v) ** p) ** (1.0 / p)
    return data + lam * (np_(cx) + np_(cy))


if __name__ == "__main__":
    key = jax.random.PRNGKey(0)
    ky, kx = jax.random.split(key)

    H, W = 128, 256                 # small single-channel image
    lam = 0.1

    y = jax.random.normal(ky, (H, W), dtype=jnp.float32)
    # __init__ sets x.data = y; init() may overwrite — perturb so the data
    # term is non-trivial.
    x = y + 0.05 * jax.random.normal(kx, (H, W), dtype=jnp.float32)

    # small tile cap so the demo exercises the multi-tile carry path (grid=4)
    for p_norm in (1.0, 2.0):
        out = objective_forward(x, y, lam, p_norm, max_tile_rows=32)
        out = jax.block_until_ready(out)
        ref = objective_reference(x, y, lam, p_norm)
        assert jnp.allclose(out, ref, rtol=1e-4, atol=1e-4), (p_norm, out, ref)

    print("KERNEL_OK")
</pallas_src>

<mosaic_0001>
module attributes {stable_mosaic.version = 11 : i64} {
  func.func @_objective_kernel(%arg0: i32, %arg1: memref<32x256xf32, #tpu.memory_space<vmem>>, %arg2: memref<32x256xf32, #tpu.memory_space<vmem>>, %arg3: memref<1x1xf32, #tpu.memory_space<vmem>>, %arg4: memref<1x256xf32, #tpu.memory_space<vmem>>, %arg5: memref<1x1xf32, #tpu.memory_space<vmem>>, %arg6: memref<1x1xf32, #tpu.memory_space<vmem>>, %arg7: memref<1x1xf32, #tpu.memory_space<vmem>>) attributes {dimension_semantics = [#tpu.dimension_semantics<arbitrary>], iteration_bounds = array<i64: 4>, scalar_prefetch = 0 : i64, scratch_operands = 4 : i64, tpu.core_type = #tpu.core_type<tc>, window_params = [{transform_indices = @transform_0, window_bounds = array<i64: 32, 256>}, {transform_indices = @transform_1, window_bounds = array<i64: 32, 256>}, {pipeline_mode = #tpu.pipeline_mode<synchronous>, transform_indices = @transform_2, window_bounds = array<i64: 1, 1>}]} {
    %c0_i32 = arith.constant 0 : i32
    %0 = arith.cmpi eq, %arg0, %c0_i32 : i32
    %1 = arith.extui %0 : i1 to i32
    %c0_i32_0 = arith.constant 0 : i32
    %2 = arith.cmpi ne, %1, %c0_i32_0 : i32
    scf.if %2 {
      %cst_30 = arith.constant 0.000000e+00 : f32
      %51 = vector.broadcast %cst_30 : f32 to vector<1x256xf32>
      %c0_31 = arith.constant 0 : index
      %c0_32 = arith.constant 0 : index
      %52 = vector.load %arg4[%c0_31, %c0_32] : memref<1x256xf32, #tpu.memory_space<vmem>>, vector<1x256xf32>
      tpu.vector_store %arg4[%c0_31, %c0_32], %51 {strides = array<i32>} : memref<1x256xf32, #tpu.memory_space<vmem>>, vector<1x256xf32>,
      %cst_33 = arith.constant 0.000000e+00 : f32
      %53 = vector.broadcast %cst_33 : f32 to vector<1x1xf32>
      %c0_34 = arith.constant 0 : index
      %c0_35 = arith.constant 0 : index
      %54 = vector.load %arg5[%c0_34, %c0_35] : memref<1x1xf32, #tpu.memory_space<vmem>>, vector<1x1xf32>
      tpu.vector_store %arg5[%c0_34, %c0_35], %53 {strides = array<i32>} : memref<1x1xf32, #tpu.memory_space<vmem>>, vector<1x1xf32>,
      %cst_36 = arith.constant 0.000000e+00 : f32
      %55 = vector.broadcast %cst_36 : f32 to vector<1x1xf32>
      %c0_37 = arith.constant 0 : index
      %c0_38 = arith.constant 0 : index
      %56 = vector.load %arg6[%c0_37, %c0_38] : memref<1x1xf32, #tpu.memory_space<vmem>>, vector<1x1xf32>
      tpu.vector_store %arg6[%c0_37, %c0_38], %55 {strides = array<i32>} : memref<1x1xf32, #tpu.memory_space<vmem>>, vector<1x1xf32>,
      %cst_39 = arith.constant 0.000000e+00 : f32
      %57 = vector.broadcast %cst_39 : f32 to vector<1x1xf32>
      %c0_40 = arith.constant 0 : index
      %c0_41 = arith.constant 0 : index
      %58 = vector.load %arg7[%c0_40, %c0_41] : memref<1x1xf32, #tpu.memory_space<vmem>>, vector<1x1xf32>
      tpu.vector_store %arg7[%c0_40, %c0_41], %57 {strides = array<i32>} : memref<1x1xf32, #tpu.memory_space<vmem>>, vector<1x1xf32>,
    } else {
    }
    %c0 = arith.constant 0 : index
    %c0_1 = arith.constant 0 : index
    %3 = vector.load %arg1[%c0, %c0_1] : memref<32x256xf32, #tpu.memory_space<vmem>>, vector<32x256xf32>
    %c0_2 = arith.constant 0 : index
    %c0_3 = arith.constant 0 : index
    %4 = vector.load %arg2[%c0_2, %c0_3] : memref<32x256xf32, #tpu.memory_space<vmem>>, vector<32x256xf32>
    %5 = arith.subf %3, %4 : vector<32x256xf32>
    %6 = arith.mulf %5, %5 : vector<32x256xf32>
    %cst = arith.constant dense<0.000000e+00> : vector<32xf32>
    %7 = vector.multi_reduction <add>, %6, %cst [1] : vector<32x256xf32> to vector<32xf32>
    %8 = vector.shape_cast %7 : vector<32xf32> to vector<32x1xf32>
    %cst_4 = arith.constant dense<0.000000e+00> : vector<1xf32>
    %9 = vector.multi_reduction <add>, %8, %cst_4 [0] : vector<32x1xf32> to vector<1xf32>
    %10 = vector.shape_cast %9 : vector<1xf32> to vector<1x1xf32>
    %11 = tpu.iota {dimensions = array<i32: 1>} : vector<32x256xi32>
    %c0_i32_5 = arith.constant 0 : i32
    %12 = vector.broadcast %c0_i32_5 : i32 to vector<32x256xi32>
    %13 = arith.cmpi eq, %11, %12 : vector<32x256xi32>
    %c1_i32 = arith.constant 1 : i32
    %14 = tpu.dynamic_rotate %3 by %c1_i32 dim 1 : vector<32x256xf32>, i32 -> vector<32x256xf32>
    %cst_6 = arith.constant 0.000000e+00 : f32
    %15 = vector.broadcast %cst_6 : f32 to vector<32x256xf32>
    %16 = arith.select %13, %15, %14 : vector<32x256xi1>, vector<32x256xf32>
    %17 = arith.subf %16, %3 : vector<32x256xf32>
    %18 = math.absf %17 : vector<32x256xf32>
    %cst_7 = arith.constant dense<0.000000e+00> : vector<32xf32>
    %19 = vector.multi_reduction <add>, %18, %cst_7 [1] : vector<32x256xf32> to vector<32xf32>
    %20 = vector.shape_cast %19 : vector<32xf32> to vector<32x1xf32>
    %cst_8 = arith.constant dense<0.000000e+00> : vector<1xf32>
    %21 = vector.multi_reduction <add>, %20, %cst_8 [0] : vector<32x1xf32> to vector<1xf32>
    %22 = vector.shape_cast %21 : vector<1xf32> to vector<1x1xf32>
    %c0_9 = arith.constant 0 : index
    %c0_10 = arith.constant 0 : index
    %23 = vector.load %arg4[%c0_9, %c0_10] : memref<1x256xf32, #tpu.memory_space<vmem>>, vector<1x256xf32>
    %24 = tpu.iota {dimensions = array<i32: 0>} : vector<32x256xi32>
    %c0_i32_11 = arith.constant 0 : i32
    %25 = vector.broadcast %c0_i32_11 : i32 to vector<32x256xi32>
    %26 = arith.cmpi eq, %24, %25 : vector<32x256xi32>
    %c1_i32_12 = arith.constant 1 : i32
    %27 = tpu.dynamic_rotate %3 by %c1_i32_12 dim 0 : vector<32x256xf32>, i32 -> vector<32x256xf32>
    %28 = vector.shape_cast %23 : vector<1x256xf32> to vector<1x256xf32>
    %29 = vector.broadcast %28 : vector<1x256xf32> to vector<32x256xf32>
    %30 = arith.select %26, %29, %27 : vector<32x256xi1>, vector<32x256xf32>
    %31 = arith.subf %30, %3 : vector<32x256xf32>
    %32 = math.absf %31 : vector<32x256xf32>
    %cst_13 = arith.constant dense<0.000000e+00> : vector<32xf32>
    %33 = vector.multi_reduction <add>, %32, %cst_13 [1] : vector<32x256xf32> to vector<32xf32>
    %34 = vector.shape_cast %33 : vector<32xf32> to vector<32x1xf32>
    %cst_14 = arith.constant dense<0.000000e+00> : vector<1xf32>
    %35 = vector.multi_reduction <add>, %34, %cst_14 [0] : vector<32x1xf32> to vector<1xf32>
    %36 = vector.shape_cast %35 : vector<1xf32> to vector<1x1xf32>
    %37 = vector.extract_strided_slice %3 {offsets = [31, 0], sizes = [1, 256], strides = [1, 1]} : vector<32x256xf32> to vector<1x256xf32>
    %c0_15 = arith.constant 0 : index
    %c0_16 = arith.constant 0 : index
    %38 = vector.load %arg4[%c0_15, %c0_16] : memref<1x256xf32, #tpu.memory_space<vmem>>, vector<1x256xf32>
    tpu.vector_store %arg4[%c0_15, %c0_16], %37 {strides = array<i32>} : memref<1x256xf32, #tpu.memory_space<vmem>>, vector<1x256xf32>,
    %c0_17 = arith.constant 0 : index
    %c0_18 = arith.constant 0 : index
    %39 = vector.load %arg5[%c0_17, %c0_18] : memref<1x1xf32, #tpu.memory_space<vmem>>, vector<1x1xf32>
    %40 = arith.addf %39, %10 : vector<1x1xf32>
    %c0_19 = arith.constant 0 : index
    %c0_20 = arith.constant 0 : index
    %41 = vector.load %arg5[%c0_19, %c0_20] : memref<1x1xf32, #tpu.memory_space<vmem>>, vector<1x1xf32>
    tpu.vector_store %arg5[%c0_19, %c0_20], %40 {strides = array<i32>} : memref<1x1xf32, #tpu.memory_space<vmem>>, vector<1x1xf32>,
    %c0_21 = arith.constant 0 : index
    %c0_22 = arith.constant 0 : index
    %42 = vector.load %arg6[%c0_21, %c0_22] : memref<1x1xf32, #tpu.memory_space<vmem>>, vector<1x1xf32>
    %43 = arith.addf %42, %22 : vector<1x1xf32>
    %c0_23 = arith.constant 0 : index
    %c0_24 = arith.constant 0 : index
    %44 = vector.load %arg6[%c0_23, %c0_24] : memref<1x1xf32, #tpu.memory_space<vmem>>, vector<1x1xf32>
    tpu.vector_store %arg6[%c0_23, %c0_24], %43 {strides = array<i32>} : memref<1x1xf32, #tpu.memory_space<vmem>>, vector<1x1xf32>,
    %c0_25 = arith.constant 0 : index
    %c0_26 = arith.constant 0 : index
    %45 = vector.load %arg7[%c0_25, %c0_26] : memref<1x1xf32, #tpu.memory_space<vmem>>, vector<1x1xf32>
    %46 = arith.addf %45, %36 : vector<1x1xf32>
    %c0_27 = arith.constant 0 : index
    %c0_28 = arith.constant 0 : index
    %47 = vector.load %arg7[%c0_27, %c0_28] : memref<1x1xf32, #tpu.memory_space<vmem>>, vector<1x1xf32>
    tpu.vector_store %arg7[%c0_27, %c0_28], %46 {strides = array<i32>} : memref<1x1xf32, #tpu.memory_space<vmem>>, vector<1x1xf32>,
    %c3_i32 = arith.constant 3 : i32
    %48 = arith.cmpi eq, %arg0, %c3_i32 : i32
    %49 = arith.extui %48 : i1 to i32
    %c0_i32_29 = arith.constant 0 : i32
    %50 = arith.cmpi ne, %49, %c0_i32_29 : i32
    scf.if %50 {
      %c0_30 = arith.constant 0 : index
      %c0_31 = arith.constant 0 : index
      %51 = vector.load %arg5[%c0_30, %c0_31] : memref<1x1xf32, #tpu.memory_space<vmem>>, vector<1x1xf32>
      %c0_32 = arith.constant 0 : index
      %c0_33 = arith.constant 0 : index
      %52 = vector.load %arg6[%c0_32, %c0_33] : memref<1x1xf32, #tpu.memory_space<vmem>>, vector<1x1xf32>
      %c0_34 = arith.constant 0 : index
      %c0_35 = arith.constant 0 : index
      %53 = vector.load %arg7[%c0_34, %c0_35] : memref<1x1xf32, #tpu.memory_space<vmem>>, vector<1x1xf32>
      %54 = arith.addf %52, %53 : vector<1x1xf32>
      %cst_36 = arith.constant 5.000000e-01 : f32
      %55 = vector.broadcast %cst_36 : f32 to vector<1x1xf32>
      %56 = arith.mulf %55, %51 : vector<1x1xf32>
      %cst_37 = arith.constant 1.000000e-01 : f32
      %57 = vector.broadcast %cst_37 : f32 to vector<1x1xf32>
      %58 = arith.mulf %57, %54 : vector<1x1xf32>
      %59 = arith.addf %56, %58 : vector<1x1xf32>
      %c0_38 = arith.constant 0 : index
      %c0_39 = arith.constant 0 : index
      %60 = vector.load %arg3[%c0_38, %c0_39] : memref<1x1xf32, #tpu.memory_space<vmem>>, vector<1x1xf32>
      tpu.vector_store %arg3[%c0_38, %c0_39], %59 {strides = array<i32>} : memref<1x1xf32, #tpu.memory_space<vmem>>, vector<1x1xf32>,
    } else {
    }
    return
  }
  func.func @transform_0(%arg0: i32) -> (i32, i32) {
    %c0_i32 = arith.constant 0 : i32
    %c0_i32_0 = arith.constant 0 : i32
    return %arg0, %c0_i32 : i32, i32
  }
  func.func @transform_1(%arg0: i32) -> (i32, i32) {
    %c0_i32 = arith.constant 0 : i32
    %c0_i32_0 = arith.constant 0 : i32
    return %arg0, %c0_i32 : i32, i32
  }
  func.func @transform_2(%arg0: i32) -> (i32, i32) {
    %c0_i32 = arith.constant 0 : i32
    %c0_i32_0 = arith.constant 0 : i32
    %c0_i32_1 = arith.constant 0 : i32
    return %c0_i32, %c0_i32_0 : i32, i32
  }
}

</mosaic_0001>

<bundles_post_ra>
// kernel: tpu_custom_call.1
= control target key start
LH: loop header
LB: loop body
LE: loop exit
PB: predicated region body
PF: predicated region fallthrough
CT: control target
= control target key end

     0   :  { %7 = vsyncpa [#allocation7], 0  ;;  %s1069_s0 = inlined_call_operand.hbm [shape: f32[128,256], index: 0, kind: input, shape index: {}]   ;;  %s1070_s1 = inlined_call_operand.hbm [shape: f32[128,256], index: 1, kind: input, shape index: {}]   ;;  %s1071_s2 = inlined_call_operand.hbm [shape: f32[1,1], index: 2, kind: output, shape index: {}]  }
   0x1   :  { %9 = vsyncpa [#allocation7 + $0x1], 0 }
   0x2   :  { %10 = vsyncpa [#allocation10], 0 }
   0x3   :  { %12 = vsyncpa [#allocation10 + $0x1], 0 }
   0x4   :  { %13 = vsyncpa [#allocation8], 0  ;;  %s773_s9 = smov 0   ;;  %s775_s10 = smov 0  }
   0x5   :  { %s777_s11 = smov 0   ;;  %s779_s12 = smov 0  }
   0x6 LB: > { %s792_s13 = sadd.s32 4294967295, %s748_s12   ;;  %s795_s14 = sadd.s32 1, %s748_s12   ;;  %s748_s12 = sphi %s779_s12, %s1081_s12   ;;  %s744_s11 = sphi %s777_s11, %s1080_s11   ;;  %s740_s10 = sphi %s775_s10, %s1079_s10   ;;  %s736_s9 = sphi %s773_s9, %s1078_s9  }
   0x7   : > { %s23_s15 = ssub.s32 %s748_s12, %s795_s14  ;;  %s26_s16 = sadd.s32 1, %s744_s11 }
   0x8   : > { %p24_p0 = scmp.eq.s32.totalorder %s23_s15, 0  ;;  %p33_p1 = scmp.ne.s32.totalorder %s744_s11, %s740_s10 }
   0x9   : > { %p34_p2 = scmp.eq.s32.totalorder %s748_s12, 0  ;;  %p39_p3 = scmp.ne.s32.totalorder %s740_s10, %s736_s9 }
   0xa   : > { %s805_s17 = scalar_select %p24_p0, %s744_s11, %s26_s16  }
   0xb   : > { %p35_p4 = por %p34_p2, %p33_p1  ;;  %p40_p5 = scmp.eq.s32.totalorder %s792_s13, 0 }
   0xc   : > { %p584_p6 = scmp.lt.s32.totalorder %s748_s12, 4  ;;  %s814_s19 = sand.u32 1, %s744_s11  }
   0xd   : > { %p809_p7 = por %p40_p5, %p39_p3  ;;  %s548_s20 = sshll.u32 %s814_s19, 6 }
   0xe   : > { %s566_s21 = sshll.u32 %s748_s12, 10  ;;  %s114_s25 = scalar_lea.vmem [#allocation6], %s548_s20 }
   0xf   : > { %s1073_s18 = scalar_select %p809_p7, 1, 0 }
  0x10   : > { %s823_s24 = scalar_lea.hbm %s1069_s0, %s566_s21  ;;  %s122_s26 = sshll.u32 %s114_s25, 4  ;;  %s827_s26 = int_to_ptr.vmem [resolvable:$true] %s122_s26 }
  0x11   : > { %p829_p8 = pnand %p584_p6, %p35_p4  ;;  %s111_s28 = scalar_lea.sflag [#allocation7], %s814_s19 }
  0x12   : > { %s626_s29 = scalar_lea.hbm %s823_s24, 1024  ;;  %s631_s4 = scalar_lea.hbm %s1069_s0, 4096 }
  0x13   : > { %p627_p10 = scmp.ne.s32.totalorder %s823_s24, %s626_s29  ;;  %p628_p11 = pneg %p829_p8 }
  0x14   : > { %p632_p0 = scmp.lt.s32.totalorder %s823_s24, %s1069_s0  ;;  %p633_p1 = scmp.lt.s32.totalorder %s631_s4, %s626_s29 }
  0x15   : > { %p629_p12 = pnand %p628_p11, %p627_p10 }
  0x16   : > { %p634_p2 = por %p633_p1, %p632_p0 }
  0x17   : > { %p630_p13 = pneg %p629_p12 }
  0x19   : > { %p635_p3 = pnand %p634_p2, %p630_p13 }
  0x1b   : > { %638 = shalt.err (!%p635_p3)
}
  0x1c   : > { %s639_s7 = scalar_lea.vmem %s827_s26, 1024  ;;  %s750_s8 = smov [#allocation6]  }
  0x1d   : > { %p640_p4 = scmp.ne.s32.totalorder %s827_s26, %s639_s7  ;;  %s644_s9 = sshll.u32 %s750_s8, 4  ;;  %s645_s9 = int_to_ptr.vmem [resolvable:$false] %s644_s9 }
  0x1e   : > { %s646_s15 = scalar_lea.vmem %s645_s9, 2048  ;;  %p647_p10 = scmp.lt.s32.totalorder %s827_s26, %s645_s9 }
  0x1f   : > { %p642_p5 = pnand %p640_p4, %p628_p11  ;;  %p648_p12 = scmp.lt.s32.totalorder %s646_s15, %s639_s7 }
  0x21   : > { %p643_p6 = pneg %p642_p5  ;;  %p649_p9 = por %p648_p12, %p647_p10 }
  0x23   : > { %p650_p0 = pnand %p649_p9, %p643_p6 }
  0x25   : > { %653 = shalt.err (!%p650_p0)
}
  0x26   : > { %s751_s16 = smov 256   ;;  %s752_s22 = smov 16  }
  0x27   : > { %580 = dma.hbm_to_vmem [thread:$0]  (!%p829_p8), %s823_s24, 1024, %s827_s26, %s111_s28, %s751_s16, %s751_s16, %s752_s22  }
  0x28   : > { %p152_p9 = scmp.lt.s32.totalorder %s748_s12, 5  ;;  %s870_s29 = scalar_lea.hbm %s1070_s1, %s566_s21 }
  0x29   : > { %p1075_p13 = scmp.ge.s32.totalorder %s748_s12, 1  ;;  %s136_s3 = scalar_lea.vmem [#allocation9], %s548_s20 }
  0x2a   : > { %s144_s4 = sshll.u32 %s136_s3, 4  ;;  %s133_s24 = scalar_lea.sflag [#allocation10], %s814_s19  ;;  %s880_s4 = int_to_ptr.vmem [resolvable:$true] %s144_s4 }
  0x2b   : > { %p874_p1 = pnand %p1075_p13, %p152_p9  ;;  %s654_s26 = scalar_lea.hbm %s870_s29, 1024 }
  0x2c   : > { %p655_p2 = scmp.ne.s32.totalorder %s870_s29, %s654_s26  ;;  %s659_s28 = scalar_lea.hbm %s1070_s1, 4096 }
  0x2d   : > { %p660_p5 = scmp.lt.s32.totalorder %s870_s29, %s1070_s1  ;;  %p661_p6 = scmp.lt.s32.totalorder %s659_s28, %s654_s26 }
  0x2e   : > { %p657_p3 = pnand %p655_p2, %p628_p11 }
  0x2f   : > { %p662_p10 = por %p661_p6, %p660_p5 }
  0x30   : > { %p658_p4 = pneg %p657_p3 }
  0x32   : > { %p663_p12 = pnand %p662_p10, %p658_p4 }
  0x34   : > { %666 = shalt.err (!%p663_p12)
}
  0x35   : > { %s667_s19 = scalar_lea.vmem %s880_s4, 1024  ;;  %s753_s20 = smov [#allocation9]  }
  0x36   : > { %p668_p0 = scmp.ne.s32.totalorder %s880_s4, %s667_s19  ;;  %s672_s7 = sshll.u32 %s753_s20, 4  ;;  %s673_s7 = int_to_ptr.vmem [resolvable:$false] %s672_s7 }
  0x37   : > { %s674_s8 = scalar_lea.vmem %s673_s7, 2048  ;;  %p675_p2 = scmp.lt.s32.totalorder %s880_s4, %s673_s7 }
  0x38   : > { %p670_p9 = pnand %p668_p0, %p628_p11  ;;  %p676_p3 = scmp.lt.s32.totalorder %s674_s8, %s667_s19 }
  0x3a   : > { %p671_p13 = pneg %p670_p9  ;;  %p677_p7 = por %p676_p3, %p675_p2 }
  0x3c   : > { %p678_p5 = pnand %p677_p7, %p671_p13 }
  0x3e   : > { %681 = shalt.err (!%p678_p5)
}
  0x3f   : > { %583 = dma.hbm_to_vmem [thread:$0]  (!%p829_p8), %s870_s29, 1024, %s880_s4, %s133_s24, %s751_s16, %s751_s16, %s752_s22  }
  0x40   : > { %156 = sbr.rel (%p874_p1) target bundleno = 403 (0x193), region = 28  ;;  %s158_s9 = sand.u32 (!%p874_p1), 1, %s740_s10  }
  0x41   : > { %s557_s15 = sshll.u32 (!%p874_p1), %s158_s9, 6  ;;  %s159_s23 = scalar_lea.sflag (!%p874_p1), [#allocation7], %s158_s9 }
  0x42   : > { %s911_s25 = scalar_lea.vmem (!%p874_p1), [#allocation6], %s557_s15  ;;  %p1077_p7 = scmp.ne.s32.totalorder (!%p874_p1), %s1073_s18, 0 }
  0x45   : > { %723 = dma.done.wait (%p1077_p7), %s159_s23, 1024  }
  0x46   : > { %725 = vsyncadd (%p1077_p7), %s159_s23, 4294966272  ;;  %s168_s27 = scalar_lea.sflag [#allocation10], %s158_s9  ;;  %s917_s3 = scalar_lea.vmem [#allocation9], %s557_s15 }
  0x47   : > { %727 = dma.done.wait (%p1077_p7), %s168_s27, 1024  }
  0x48   : > { %729 = vsyncadd (%p1077_p7), %s168_s27, 4294966272  ;;  %p559_p8 = scmp.ne.s32.totalorder %s792_s13, 0 }
  0x4a   : > { %197 = sbr.rel (%p559_p8) target bundleno = 83 (0x53), region = 40 }
  0x4f   : > { %v198_v0 = vlaneseq  ;;  %vm203_vm0 = vcmask 0   ;;  %v754_v1 = vmov 0.0  }
  0x50   : > { %204 = vst.msk [vmem:[#allocation3] sm:$0x1] %vm203_vm0, %v754_v1  ;;  %205 = vst.msk [vmem:[#allocation4] sm:$0x1] %vm203_vm0, %v754_v1 }
  0x51   : > { %206 = vst.msk [vmem:[#allocation5] sm:$0x1] %vm203_vm0, %v754_v1  ;;  %vm200_vm1 = vcmp.lt.s32.totalorder %v198_v0, 256 }
  0x52   : > { %202 = vst.msk [vmem:[#allocation2] sm:$0x3] %vm200_vm1, %v754_v1 }
  0x53 PF: > { %v925_v2 = vld [vmem:[%s911_s25 + $0x8] sm:$0xff]  ;;  %v928_v3 = vld [vmem:[%s911_s25] sm:$0xff]  ;;  %v260_v4 = vlaneseq  ;;  %s755_s18 = smov 1   ;;  %v933_v5 = vld [vmem:[%s911_s25 + $0x18] sm:$0xff]  ;;  %v756_v6 = vmov 1966171168  }
  0x54   : > { %273 = vrot.lane.b32.xlu1 %v925_v2, %s755_s18  ;;  %265 = vrot.lane.b32.xlu0 %v928_v3, %s755_s18  ;;  %v422_v7 = vunpack.c.l.s4 %v756_v6  ;;  %v936_v8 = vld [vmem:[%s911_s25 + $0x10] sm:$0xff]  ;;  %v939_v9 = vld [vmem:[%s911_s25 + $0x38] sm:$0xff]  ;;  %v348_v36 = vrot.slane %v933_v5, 7  ;;  %v345_v41 = vrot.slane %v928_v3, 7  ;;  %v346_v42 = vrot.slane %v925_v2, 7  ;;  %p560_p11 = scmp.ne.s32.totalorder %s792_s13, 3 }
  0x55   : > { %v942_v10 = vld [vmem:[%s911_s25 + $0x30] sm:$0xff]  ;;  %v945_v11 = vshrl.u32 %v260_v4, 7  ;;  %v953_v15 = vld [vmem:[%s911_s25 + $0x28] sm:$0xff]  ;;  %v956_v16 = vld [vmem:[%s911_s25 + $0x20] sm:$0xff]  ;;  %vm440_vm2 = vcmp.lt.s32.totalorder %v260_v4, 256  ;;  %v352_v24 = vrot.slane %v939_v9, 7 }
  0x56   : > { %v420_v12 = vcombine.high %v942_v10, %v939_v9  ;;  %v423_v13 = vunpack.c.0.s8 %v422_v7  ;;  %v351_v22 = vrot.slane %v942_v10, 7  ;;  %v349_v23 = vrot.slane %v956_v16, 7  ;;  %v215_v33 = vld [vmem:[%s917_s3] sm:$0xff]  ;;  %v216_v34 = vld [vmem:[%s917_s3 + $0x8] sm:$0xff]  ;;  %v217_v45 = vld [vmem:[%s917_s3 + $0x10] sm:$0xff] }
  0x57   : > { %vm353_vm3 = vcmp.lt.s32.totalorder %v945_v11, 1  ;;  %v350_v25 = vrot.slane %v953_v15, 7  ;;  %v347_v35 = vrot.slane %v936_v8, 7  ;;  %v365_v37 = vsub.s32 0, %v945_v11  ;;  %v218_v46 = vld [vmem:[%s917_s3 + $0x18] sm:$0xff]  ;;  %v221_v57 = vld [vmem:[%s917_s3 + $0x30] sm:$0xff] }
  0x58   : > { %275 = vrot.lane.b32.xlu1 %v933_v5, %s755_s18  ;;  %267 = vrot.lane.b32.xlu0 %v936_v8, %s755_s18  ;;  %v426_v14 = vsub.s32 %v423_v13, %v945_v11  ;;  %v354_v26 = vsel %vm353_vm3, %v349_v23, %v351_v22  ;;  %v369_v38 = vsub.s32 1, %v945_v11  ;;  %v223_v39 = vsub.f32 %v928_v3, %v215_v33  ;;  %v222_v58 = vld [vmem:[%s917_s3 + $0x38] sm:$0xff] }
  0x59   : > { %v335_v21 = vld [vmem:[#allocation2] sm:$0x3]  ;;  %v355_v27 = vsel %vm353_vm3, %v350_v25, %v352_v24  ;;  %v387_v28 = vsub.f32 %v354_v26, %v942_v10  ;;  %v224_v40 = vsub.f32 %v925_v2, %v216_v34  ;;  %v358_v43 = vsel %vm353_vm3, %v345_v41, %v347_v35 }
  0x5a   : > { %v427_v17 = vrot.slane %v420_v12, %v426_v14  ;;  %v388_v29 = vsub.f32 %v355_v27, %v939_v9  ;;  %v359_v44 = vsel %vm353_vm3, %v346_v42, %v348_v36  ;;  %vm341_vm4 = vcmp.eq.s32.totalorder %v945_v11, 0 }
  0x5b   : > { %v395_v30 = vand.u32 2147483647, %v387_v28  ;;  %v366_v47 = vrot.slane %v335_v21, %v365_v37  ;;  %v370_v48 = vrot.slane %v335_v21, %v369_v38  ;;  %v231_v49 = vmul.f32 %v223_v39, %v223_v39 }
  0x5c   : > { %277 = vrot.lane.b32.xlu1 %v953_v15, %s755_s18  ;;  %269 = vrot.lane.b32.xlu0 %v956_v16, %s755_s18  ;;  %v428_v18 = vcombine.high %v427_v17, %v427_v17  ;;  %v396_v31 = vand.u32 2147483647, %v388_v29  ;;  %v232_v50 = vmul.f32 %v224_v40, %v224_v40  ;;  %v360_v51 = vsel %vm353_vm3, %v351_v22, %v345_v41  ;;  %v220_v17 = vld [vmem:[%s917_s3 + $0x28] sm:$0xff] }
  0x5d   : > { %v361_v52 = vsel %vm353_vm3, %v352_v24, %v346_v42  ;;  %v383_v53 = vsub.f32 %v358_v43, %v936_v8  ;;  %v384_v54 = vsub.f32 %v359_v44, %v933_v5  ;;  %v225_v55 = vsub.f32 %v936_v8, %v217_v45 }
  0x5e   : > { %v435_v19 = vrot.slane %v428_v18, %v426_v14  ;;  %v974_v32 = vadd.f32 %v396_v31, %v395_v30  ;;  %v226_v56 = vsub.f32 %v933_v5, %v218_v46  ;;  %v373_v59 = vsel %vm341_vm4, %v366_v47, %v360_v51  ;;  %v219_v14 = vld [vmem:[%s917_s3 + $0x20] sm:$0xff] }
  0x5f   : > { %v374_v60 = vsel %vm341_vm4, %v370_v48, %v361_v52  ;;  %v239_v61 = vadd.f32 %v232_v50, %v231_v49  ;;  %v391_v62 = vand.u32 2147483647, %v383_v53  ;;  %v392_v63 = vand.u32 2147483647, %v384_v54 }
  0x60   : > { %279 = vrot.lane.b32.xlu1 %v939_v9, %s755_s18  ;;  %271 = vrot.lane.b32.xlu0 %v942_v10, %s755_s18  ;;  %v436_v20 = vcombine.high %v435_v19, %v435_v19  ;;  %v229_v0 = vsub.f32 %v942_v10, %v221_v57  ;;  %v230_v1 = vsub.f32 %v939_v9, %v222_v58  ;;  %v261_v11 = vand.u32 127, %v260_v4 }
  0x61   : > { %v233_v6 = vmul.f32 %v225_v55, %v225_v55  ;;  %v234_v7 = vmul.f32 %v226_v56, %v226_v56  ;;  %v381_v12 = vsub.f32 %v373_v59, %v928_v3  ;;  %v382_v13 = vsub.f32 %v374_v60, %v925_v2 }
  0x62   : > { %442 = vst.msk [vmem:[#allocation2] sm:$0x3] %vm440_vm2, %v436_v20  ;;  %v400_v18 = vadd.f32 %v392_v63, %v391_v62  ;;  %v227_v19 = vsub.f32 %v956_v16, %v219_v14  ;;  %v237_v20 = vmul.f32 %v229_v0, %v229_v0  ;;  %v238_v21 = vmul.f32 %v230_v1, %v230_v1 }
  0x63   : > { %v242_v22 = vadd.f32 %v234_v7, %v233_v6  ;;  %v389_v24 = vand.u32 2147483647, %v381_v12  ;;  %v390_v26 = vand.u32 2147483647, %v382_v13  ;;  %v228_v27 = vsub.f32 %v953_v15, %v220_v17 }
  0x64   : > { %v356_v28 = vsel %vm353_vm3, %v347_v35, %v349_v23  ;;  %v357_v29 = vsel %vm353_vm3, %v348_v36, %v350_v25  ;;  %v235_v30 = vmul.f32 %v227_v19, %v227_v19  ;;  %v248_v31 = vadd.f32 %v238_v21, %v237_v20 }
  0x65   : > { %v397_v33 = vadd.f32 %v390_v26, %v389_v24  ;;  %v236_v34 = vmul.f32 %v228_v27, %v228_v27  ;;  %v385_v37 = vsub.f32 %v356_v28, %v956_v16  ;;  %v386_v38 = vsub.f32 %v357_v29, %v953_v15 }
  0x66   : > { %vm281_vm5 = vcmp.lt.s32.totalorder %v261_v11, 1  ;;  %vm263_vm6 = vcmp.eq.s32.totalorder %v261_v11, 0  ;;  %vm445_vm7 = vcmask 0  }
  0x67   : > { %v245_v39 = vadd.f32 %v236_v34, %v235_v30  ;;  %v393_v40 = vand.u32 2147483647, %v385_v37  ;;  %v394_v41 = vand.u32 2147483647, %v386_v38  ;;  %v443_v34 = vld [vmem:[#allocation3] sm:$0x1] }
  0x69   : > { %v403_v23 = vadd.f32 %v394_v41, %v393_v40 }
  0x7f   : > { %240 = vadd.xlane.f32.xlu0 %v239_v61 }
  0x83   : > { %401 = vadd.xlane.f32.xlu0 %v400_v18 }
  0x84   : > { %243 = vadd.xlane.f32.xlu1 %v242_v22 }
  0x87   : > { %249 = vadd.xlane.f32.xlu0 %v248_v31 }
  0x88   : > { %398 = vadd.xlane.f32.xlu1 %v397_v33 }
  0x8c   : > { %246 = vadd.xlane.f32.xlu1 %v245_v39 }
  0x90   : > { %404 = vadd.xlane.f32.xlu1 %v403_v23 }
  0xc6   : > { %v274_v25 = vpop.permute.xlu1 %273  ;;  %v266_v35 = vpop.permute.xlu0 %265 }
  0xc7   : > { %v282_v36 = vsel %vm281_vm5, %v266_v35, %v274_v25  ;;  %v286_v42 = vsel %vm281_vm5, %v274_v25, %v266_v35 }
  0xc8   : > { %v290_v43 = vsel %vm263_vm6, 0.0, %v286_v42  ;;  %v299_v44 = vsub.f32 %v282_v36, %v925_v2 }
  0xc9   : > { %v298_v45 = vsub.f32 %v290_v43, %v928_v3 }
  0xca   : > { %v307_v46 = vand.u32 2147483647, %v299_v44  ;;  %v276_v47 = vpop.permute.xlu1 %275  ;;  %v268_v48 = vpop.permute.xlu0 %267 }
  0xcb   : > { %v283_v49 = vsel %vm281_vm5, %v268_v48, %v276_v47  ;;  %v287_v4 = vsel %vm281_vm5, %v276_v47, %v268_v48  ;;  %v306_v50 = vand.u32 2147483647, %v298_v45 }
  0xcc   : > { %v292_v51 = vsel %vm263_vm6, 0.0, %v287_v4  ;;  %v301_v52 = vsub.f32 %v283_v49, %v933_v5 }
  0xcd   : > { %v300_v53 = vsub.f32 %v292_v51, %v936_v8  ;;  %v314_v54 = vadd.f32 %v307_v46, %v306_v50 }
  0xce   : > { %v309_v55 = vand.u32 2147483647, %v301_v52  ;;  %v278_v56 = vpop.permute.xlu1 %277  ;;  %v270_v2 = vpop.permute.xlu0 %269 }
  0xcf   : > { %v284_v3 = vsel %vm281_vm5, %v270_v2, %v278_v56  ;;  %v288_v57 = vsel %vm281_vm5, %v278_v56, %v270_v2  ;;  %315 = vadd.xlane.f32.xlu0 %v314_v54  ;;  %v308_v58 = vand.u32 2147483647, %v300_v53  ;;  %v447_v53 = vld [vmem:[#allocation4] sm:$0x1]  ;;  %v450_v54 = vld [vmem:[#allocation5] sm:$0x1] }
  0xd0   : > { %v294_v59 = vsel %vm263_vm6, 0.0, %v288_v57  ;;  %v303_v60 = vsub.f32 %v284_v3, %v953_v15 }
  0xd1   : > { %v302_v61 = vsub.f32 %v294_v59, %v956_v16  ;;  %v317_v62 = vadd.f32 %v309_v55, %v308_v58 }
  0xd2   : > { %v311_v5 = vand.u32 2147483647, %v303_v60  ;;  %v280_v63 = vpop.permute.xlu1 %279  ;;  %v272_v8 = vpop.permute.xlu0 %271 }
  0xd3   : > { %v285_v0 = vsel %vm281_vm5, %v272_v8, %v280_v63  ;;  %v289_v1 = vsel %vm281_vm5, %v280_v63, %v272_v8  ;;  %318 = vadd.xlane.f32.xlu0 %v317_v62  ;;  %v310_v6 = vand.u32 2147483647, %v302_v61 }
  0xd4   : > { %v296_v7 = vsel %vm263_vm6, 0.0, %v289_v1  ;;  %v305_v12 = vsub.f32 %v285_v0, %v939_v9 }
  0xd5   : > { %v304_v13 = vsub.f32 %v296_v7, %v942_v10  ;;  %v320_v14 = vadd.f32 %v311_v5, %v310_v6 }
  0xd6   : > { %v313_v15 = vand.u32 2147483647, %v305_v12 }
  0xd7   : > { %321 = vadd.xlane.f32.xlu0 %v320_v14  ;;  %v312_v16 = vand.u32 2147483647, %v304_v13 }
  0xd9   : > { %v323_v17 = vadd.f32 %v313_v15, %v312_v16 }
  0xdb   : > { %324 = vadd.xlane.f32.xlu1 %v323_v17  ;;  %407 = vadd.xlane.f32.xlu0 %v974_v32 }
 0x108   : > { %v241_v18 = vpop.xlane.xlu0 %240 }
 0x10c   : > { %v402_v20 = vpop.xlane.xlu0 %401 }
 0x10d   : > { %v244_v19 = vpop.xlane.xlu1 %243 }
 0x10e   : > { %v251_v22 = vadd.f32 %v244_v19, %v241_v18 }
 0x110   : > { %v250_v27 = vpop.xlane.xlu0 %249 }
 0x111   : > { %v399_v21 = vpop.xlane.xlu1 %398 }
 0x112   : > { %v409_v24 = vadd.f32 %v402_v20, %v399_v21 }
 0x115   : > { %v247_v26 = vpop.xlane.xlu1 %246 }
 0x116   : > { %v252_v28 = vadd.f32 %v251_v22, %v247_v26 }
 0x118   : > { %v253_v9 = vadd.f32 %v252_v28, %v250_v27 }
 0x119   : > { %v405_v40 = vpop.xlane.xlu1 %404 }
 0x11a   : > { %v254_v29 = vrot.slane %v253_v9, 4  ;;  %v410_v11 = vadd.f32 %v409_v24, %v405_v40 }
 0x11c   : > { %v255_v10 = vadd.f32 %v254_v29, %v253_v9 }
 0x11e   : > { %v256_v30 = vrot.slane %v255_v10, 2 }
 0x120   : > { %v257_v31 = vadd.f32 %v256_v30, %v255_v10 }
 0x122   : > { %v258_v33 = vrot.slane %v257_v31, 1 }
 0x124   : > { %v259_v37 = vadd.f32 %v258_v33, %v257_v31 }
 0x126   : > { %v444_v38 = vadd.f32 %v443_v34, %v259_v37 }
 0x128   : > { %446 = vst.msk [vmem:[#allocation3] sm:$0x1] %vm445_vm7, %v444_v38 }
 0x158   : > { %v316_v32 = vpop.xlane.xlu0 %315 }
 0x15c   : > { %v319_v39 = vpop.xlane.xlu0 %318 }
 0x15d   : > { %v326_v23 = vadd.f32 %v319_v39, %v316_v32 }
 0x160   : > { %v322_v41 = vpop.xlane.xlu0 %321 }
 0x161   : > { %v327_v25 = vadd.f32 %v326_v23, %v322_v41 }
 0x164   : > { %v325_v35 = vpop.xlane.xlu1 %324  ;;  %v408_v36 = vpop.xlane.xlu0 %407 }
 0x165   : > { %v328_v42 = vadd.f32 %v327_v25, %v325_v35  ;;  %v411_v43 = vadd.f32 %v410_v11, %v408_v36 }
 0x167   : > { %v329_v44 = vrot.slane %v328_v42, 4  ;;  %v412_v45 = vrot.slane %v411_v43, 4 }
 0x169   : > { %v330_v46 = vadd.f32 %v329_v44, %v328_v42  ;;  %v413_v47 = vadd.f32 %v412_v45, %v411_v43 }
 0x16b   : > { %v331_v48 = vrot.slane %v330_v46, 2  ;;  %v414_v49 = vrot.slane %v413_v47, 2 }
 0x16d   : > { %v332_v4 = vadd.f32 %v331_v48, %v330_v46  ;;  %v415_v50 = vadd.f32 %v414_v49, %v413_v47 }
 0x16f   : > { %v333_v51 = vrot.slane %v332_v4, 1  ;;  %v416_v52 = vrot.slane %v415_v50, 1 }
 0x171   : > { %v334_v55 = vadd.f32 %v333_v51, %v332_v4  ;;  %v417_v56 = vadd.f32 %v416_v52, %v415_v50  ;;  %456 = sbr.rel (%p560_p11) target bundleno = 388 (0x184), region = 44 }
 0x173   : > { %v448_v2 = vadd.f32 %v447_v53, %v334_v55  ;;  %v451_v3 = vadd.f32 %v450_v54, %v417_v56 }
 0x175   : > { %449 = vst.msk [vmem:[#allocation4] sm:$0x1] %vm445_vm7, %v448_v2  ;;  %452 = vst.msk [vmem:[#allocation5] sm:$0x1] %vm445_vm7, %v451_v3 }
 0x176   : > { %v457_v57 = vld [vmem:[#allocation3] sm:$0x1] }
 0x177   : > { %v461_v61 = vmul.f32 0.5, %v457_v57 }
 0x17c   : > { %v458_v58 = vld [vmem:[#allocation4] sm:$0x1]  ;;  %v459_v59 = vld [vmem:[#allocation5] sm:$0x1] }
 0x17d   : > { %v460_v60 = vadd.f32 %v459_v59, %v458_v58 }
 0x17f   : > { %v462_v62 = vmul.f32 0.1, %v460_v60 }
 0x181   : > { %v463_v5 = vadd.f32 %v462_v62, %v461_v61 }
 0x183   : > { %464 = vst.msk [vmem:[#allocation11] sm:$0x1] %vm445_vm7, %v463_v5 }
 0x184 PF: > { %p585_p1 = scmp.eq.s32.totalorder %s792_s13, 3  ;;  %s757_s16 = smov [#allocation11]  }
 0x185   : > { %s472_s22 = sshll.u32 %s757_s16, 4  ;;  %s473_s22 = int_to_ptr.vmem [resolvable:$true] %s472_s22 }
 0x186   : > { %s682_s29 = scalar_lea.vmem %s473_s22, 16  ;;  %s688_s30 = scalar_lea.vmem %s473_s22, 32 }
 0x187   : > { %p683_p4 = scmp.ne.s32.totalorder %s473_s22, %s682_s29  ;;  %p689_p12 = scmp.lt.s32.totalorder %s473_s22, %s473_s22 }
 0x188   : > { %p690_p0 = scmp.lt.s32.totalorder %s688_s30, %s682_s29 }
 0x189   : > { %p684_p6 = pnand %p683_p4, %p585_p1 }
 0x18a   : > { %p691_p9 = por %p690_p0, %p689_p12 }
 0x18b   : > { %p685_p10 = pneg %p684_p6 }
 0x18d   : > { %p692_p13 = pnand %p691_p9, %p685_p10 }
 0x18f   : > { %695 = shalt.err (!%p692_p13)
}
 0x190   : > { %574 = dma.vmem_to_hbm [thread:$0]  (%p585_p1), %s473_s22, 16, %s1071_s2, [#allocation8]  }
 0x191   : > { %731 = dma.done.wait (%p585_p1), [#allocation8], 16  }
 0x192   : > { %733 = vsyncadd (%p585_p1), [#allocation8], 4294967280 }
 0x193 PF: > { %p16_p2 = scmp.ge.s32.totalorder %s795_s14, 6   ;;  %s1078_s9 = smov %s740_s10 }
 0x194   : > { %s1079_s10 = smov %s744_s11  ;;  %s1080_s11 = smov %s805_s17 }
 0x195   : > { %s1081_s12 = smov %s795_s14  ;;  %18 = sbr.rel (!%p16_p2) target bundleno = 6 (0x6), region = 86 }
 0x19a   :  { %485 = vsyncpa [#allocation7], 1 }
 0x19b   :  { %487 = vsyncpa [#allocation7 + $0x1], 1 }
 0x19c   :  { %488 = vsyncpa [#allocation10], 1 }
 0x19d   :  { %490 = vsyncpa [#allocation10 + $0x1], 1 }
 0x19e   :  { %491 = vsyncpa [#allocation8], 1 }
 0x19f   :  { %493 = vsyncpa [#allocation8 + $0x1], 1 }

</bundles_post_ra>
